<compile_context>
chip_gen: v6e
topology: v6e:2x2x1
jax: 0.10.0
libtpu: 0.0.40
codegen_flags: <defaults>
</compile_context>

<pallas_src>
import jax
import jax.numpy as jnp
import numpy as np
from jax.experimental import pallas as pl
from jax.experimental.pallas import tpu as pltpu

# kornia.color.rgb_to_grayscale weights
_GRAY_R, _GRAY_G, _GRAY_B = 0.299, 0.587, 0.114

_LANES = 128         # vreg lane width
_SUBLANES = 8        # vreg sublane depth for f32
_TARGET_ROWS = 1024  # 1024 rows * 128 lanes ~ 19 MiB double-buffered I/O/step


def _mask_fill_nonzeros(x):
    return jnp.where(x <= 0.0, jnp.ones_like(x), x)


def _iid_kernel(ws_ref, ns_ref, alb_ref,
                rgb_out_ref, alb_out_ref, shad_out_ref, shadow_out_ref):
    ws = ws_ref[...]    # (1, 3, TR, 128)
    ns = ns_ref[...]    # (1, 3, TR, 128)
    alb = alb_ref[...]  # (1, 3, TR, 128)

    # ---- extract_shadow(rgb_ws, rgb_ns, one_channel=True) ----
    ws_f = _mask_fill_nonzeros(ws)
    ns_f = _mask_fill_nonzeros(ns)
    # exp(log(a) - log(b)) == a / b; both operands are mask-filled strictly
    # positive, so the identity holds and we skip 3 logs/exps per pixel.
    shadow_rgb = ws_f / ns_f
    shadow = (_GRAY_R * shadow_rgb[:, 0:1]
              + _GRAY_G * shadow_rgb[:, 1:2]
              + _GRAY_B * shadow_rgb[:, 2:3])           # (1, 1, TR, 128)
    shadow = jnp.clip(shadow, 0.0, 1.0)

    # ---- decompose(rgb_ns, albedo_tensor) ----
    alb_f = _mask_fill_nonzeros(alb)
    shading = _mask_fill_nonzeros(jnp.clip(ns / alb_f, 0.0, 1.0))  # in (0,1]
    albedo_refined = jnp.clip(ns / shading, 0.0, 1.0)
    # torch.clip(shading, 0, 1) in decompose() is a no-op here: shading is
    # already in (0,1] after clip + mask-fill, so it is dropped.

    # ---- produce_rgb(albedo, shading, shadow, tozeroone=False) ----
    rgb_recon = jnp.clip(albedo_refined * shading * shadow, 0.0, 1.0)

    # ---- Normalize((0.5,), (0.5,)) -> (x - 0.5) / 0.5 ----
    rgb_out_ref[...] = rgb_recon * 2.0 - 1.0
    alb_out_ref[...] = albedo_refined * 2.0 - 1.0
    shad_out_ref[...] = shading * 2.0 - 1.0
    shadow_out_ref[...] = shadow * 2.0 - 1.0


def _choose_tile(rows, n_batch, target_rows):
    """Pick (tile_rows, padded_rows) for the flattened spatial axis.

    Guarantees: tile_rows is a multiple of 8 OR equals padded_rows (full
    extent), and padding is only introduced when unavoidable.
    """
    target = max(_SUBLANES, (target_rows // _SUBLANES) * _SUBLANES)

    if rows <= target:
        # Whole spatial extent in one block: block dim == full array dim is
        # always legal, no padding needed.
        tr, grid_s = rows, 1
        # Megacore (v7x, 2 TCs): if the batch alone gives a 1-step grid,
        # split the row axis in two — but only when that stays pad-free.
        if n_batch == 1 and rows >= 2 * _SUBLANES and rows % (2 * _SUBLANES) == 0:
            tr, grid_s = rows // 2, 2
        return tr, tr * grid_s

    # Multi-tile path: tr must be a multiple of 8.  Prefer an exact divisor
    # of `rows` (no pad -> no extra HBM pass); accept divisors down to
    # ~target/8 before falling back to padding.
    if rows % _SUBLANES == 0:
        lower = max(_SUBLANES, target // 8)
        for tr in range(target, lower - 1, -_SUBLANES):
            if rows % tr == 0:
                return tr, rows

    tr = target
    return tr, pl.cdiv(rows, tr) * tr


def iid_transform_forward(rgb_ws, rgb_ns, albedo_tensor, *,
                          target_rows=_TARGET_ROWS):
    N, C, H, W = rgb_ws.shape
    assert C == 3, "IIDTransform forward requires RGB (3-channel) inputs"
    S = H * W

    # Lane-dense flattened view: (N, C, rows_pad, 128).
    rows = pl.cdiv(S, _LANES)
    tr, rows_pad = _choose_tile(rows, N, target_rows)
    s_pad = rows_pad * _LANES
    grid_s = rows_pad // tr

    def prep(x):
        if s_pad == S:
            # Fast path: pure reshape, no extra HBM pass.
            return x.reshape(N, C, rows_pad, _LANES)
        x = x.reshape(N, C, S)
        # Zero padding is safe: mask-fill maps 0 -> 1, so no inf/nan.
        x = jnp.pad(x, ((0, 0), (0, 0), (0, s_pad - S)))
        return x.reshape(N, C, rows_pad, _LANES)

    ws_p = prep(rgb_ws)
    ns_p = prep(rgb_ns)
    alb_p = prep(albedo_tensor)

    spec3 = pl.BlockSpec((1, C, tr, _LANES), lambda n, s: (n, 0, s, 0))
    spec1 = pl.BlockSpec((1, 1, tr, _LANES), lambda n, s: (n, 0, s, 0))

    out_shapes = (
        jax.ShapeDtypeStruct((N, C, rows_pad, _LANES), rgb_ws.dtype),  # rgb
        jax.ShapeDtypeStruct((N, C, rows_pad, _LANES), rgb_ws.dtype),  # albedo
        jax.ShapeDtypeStruct((N, C, rows_pad, _LANES), rgb_ws.dtype),  # shading
        jax.ShapeDtypeStruct((N, 1, rows_pad, _LANES), rgb_ws.dtype),  # shadow
    )

    # 19 channel-planes (3x3 in + 3x3 + 1x1 out) of f32 per pixel.
    cost = pl.CostEstimate(
        flops=int(90 * N * s_pad),
        transcendentals=0,
        bytes_accessed=int(19 * 4 * N * s_pad),
    )

    outs = pl.pallas_call(
        _iid_kernel,
        out_shape=out_shapes,
        grid_spec=pltpu.PrefetchScalarGridSpec(
            num_scalar_prefetch=0,
            grid=(N, grid_s),
            in_specs=[spec3, spec3, spec3],
            out_specs=[spec3, spec3, spec3, spec1],
        ),
        compiler_params=pltpu.CompilerParams(
            dimension_semantics=("parallel", "parallel"),
            vmem_limit_bytes=32 * 1024 * 1024),
        cost_estimate=cost,
    )(ws_p, ns_p, alb_p)

    def unprep(x, c):
        if s_pad == S:
            return x.reshape(N, c, H, W)
        return x.reshape(N, c, s_pad)[:, :, :S].reshape(N, c, H, W)

    rgb_recon, albedo_refined, shading_refined, shadow_tensor = outs
    return (unprep(rgb_recon, C), unprep(albedo_refined, C),
            unprep(shading_refined, C), unprep(shadow_tensor, 1))


def _reference_forward(rgb_ws, rgb_ns, albedo):
    """Pure-JAX reference matching the PyTorch forward (exp(log-log) path)."""
    ws_r = _mask_fill_nonzeros(rgb_ws)
    ns_r = _mask_fill_nonzeros(rgb_ns)
    shadow_rgb = jnp.exp(jnp.log(ws_r) - jnp.log(ns_r))
    shadow = (_GRAY_R * shadow_rgb[:, 0:1] + _GRAY_G * shadow_rgb[:, 1:2]
              + _GRAY_B * shadow_rgb[:, 2:3])
    shadow = jnp.clip(shadow, 0.0, 1.0)

    alb_filled = _mask_fill_nonzeros(albedo)
    shading = jnp.clip(rgb_ns / alb_filled, 0.0, 1.0)
    shading = _mask_fill_nonzeros(shading)
    albedo_ref = jnp.clip(rgb_ns / shading, 0.0, 1.0)
    shading_ref = jnp.clip(shading, 0.0, 1.0)

    rgb_recon = jnp.clip(albedo_ref * shading_ref * shadow, 0.0, 1.0)
    n = lambda x: x * 2.0 - 1.0
    return n(rgb_recon), n(albedo_ref), n(shading_ref), n(shadow)


def _check(key, shape, **kw):
    k1, k2, k3 = jax.random.split(key, 3)
    # Values in [-0.25, 1.0] so the <=0 mask-fill paths are exercised.
    rgb_ws = jax.random.uniform(k1, shape, jnp.float32, -0.25, 1.0)
    rgb_ns = jax.random.uniform(k2, shape, jnp.float32, -0.25, 1.0)
    albedo = jax.random.uniform(k3, shape, jnp.float32, -0.25, 1.0)

    outs = iid_transform_forward(rgb_ws, rgb_ns, albedo, **kw)
    outs = jax.block_until_ready(outs)

    refs = _reference_forward(rgb_ws, rgb_ns, albedo)
    for got, ref in zip(outs, refs):
        np.testing.assert_allclose(np.asarray(got), np.asarray(ref),
                                   rtol=1e-5, atol=1e-5)


if __name__ == "__main__":
    key = jax.random.PRNGKey(0)
    k_a, k_b, k_c, k_d, k_e = jax.random.split(key, 5)

    # batch=2, RGB, spatial=16x16 (lane-aligned fast path, single tile).
    _check(k_a, (2, 3, 16, 16))
    # Odd spatial size -> exercises the flatten/pad/unpad fallback path.
    _check(k_b, (2, 3, 17, 19))
    # Small target_rows -> exercises the pad-free multi-tile spatial grid.
    _check(k_c, (2, 3, 32, 64), target_rows=8)
    # batch=1, lane-aligned -> exercises the megacore row-axis split.
    _check(k_d, (1, 3, 32, 128))
    # rows not a multiple of 8 with multi-tiling -> padded multi-tile fallback.
    _check(k_e, (2, 3, 5, 256), target_rows=8)

    print("KERNEL_OK")
</pallas_src>

<mosaic_0001>
module attributes {stable_mosaic.version = 11 : i64} {
  func.func @_iid_kernel(%arg0: i32, %arg1: i32, %arg2: memref<1x3x2x128xf32, #tpu.memory_space<vmem>>, %arg3: memref<1x3x2x128xf32, #tpu.memory_space<vmem>>, %arg4: memref<1x3x2x128xf32, #tpu.memory_space<vmem>>, %arg5: memref<1x3x2x128xf32, #tpu.memory_space<vmem>>, %arg6: memref<1x3x2x128xf32, #tpu.memory_space<vmem>>, %arg7: memref<1x3x2x128xf32, #tpu.memory_space<vmem>>, %arg8: memref<1x1x2x128xf32, #tpu.memory_space<vmem>>) attributes {dimension_semantics = [#tpu.dimension_semantics<parallel>, #tpu.dimension_semantics<parallel>], iteration_bounds = array<i64: 2, 1>, scalar_prefetch = 0 : i64, scratch_operands = 0 : i64, tpu.core_type = #tpu.core_type<tc>, window_params = [{transform_indices = @transform_0, window_bounds = array<i64: 1, 3, 2, 128>}, {transform_indices = @transform_1, window_bounds = array<i64: 1, 3, 2, 128>}, {transform_indices = @transform_2, window_bounds = array<i64: 1, 3, 2, 128>}, {transform_indices = @transform_3, window_bounds = array<i64: 1, 3, 2, 128>}, {transform_indices = @transform_4, window_bounds = array<i64: 1, 3, 2, 128>}, {transform_indices = @transform_5, window_bounds = array<i64: 1, 3, 2, 128>}, {transform_indices = @transform_6, window_bounds = array<i64: 1, 1, 2, 128>}]} {
    %c0 = arith.constant 0 : index
    %c0_0 = arith.constant 0 : index
    %c0_1 = arith.constant 0 : index
    %c0_2 = arith.constant 0 : index
    %0 = vector.load %arg2[%c0, %c0_0, %c0_1, %c0_2] : memref<1x3x2x128xf32, #tpu.memory_space<vmem>>, vector<1x3x2x128xf32>
    %c0_3 = arith.constant 0 : index
    %c0_4 = arith.constant 0 : index
    %c0_5 = arith.constant 0 : index
    %c0_6 = arith.constant 0 : index
    %1 = vector.load %arg3[%c0_3, %c0_4, %c0_5, %c0_6] : memref<1x3x2x128xf32, #tpu.memory_space<vmem>>, vector<1x3x2x128xf32>
    %c0_7 = arith.constant 0 : index
    %c0_8 = arith.constant 0 : index
    %c0_9 = arith.constant 0 : index
    %c0_10 = arith.constant 0 : index
    %2 = vector.load %arg4[%c0_7, %c0_8, %c0_9, %c0_10] : memref<1x3x2x128xf32, #tpu.memory_space<vmem>>, vector<1x3x2x128xf32>
    %cst = arith.constant 0.000000e+00 : f32
    %3 = vector.broadcast %cst : f32 to vector<1x3x2x128xf32>
    %4 = arith.cmpf ole, %0, %3 : vector<1x3x2x128xf32>
    %cst_11 = arith.constant 1.000000e+00 : f32
    %5 = vector.broadcast %cst_11 : f32 to vector<1x3x2x128xf32>
    %6 = arith.select %4, %5, %0 : vector<1x3x2x128xi1>, vector<1x3x2x128xf32>
    %cst_12 = arith.constant 0.000000e+00 : f32
    %7 = vector.broadcast %cst_12 : f32 to vector<1x3x2x128xf32>
    %8 = arith.cmpf ole, %1, %7 : vector<1x3x2x128xf32>
    %cst_13 = arith.constant 1.000000e+00 : f32
    %9 = vector.broadcast %cst_13 : f32 to vector<1x3x2x128xf32>
    %10 = arith.select %8, %9, %1 : vector<1x3x2x128xi1>, vector<1x3x2x128xf32>
    %11 = arith.divf %6, %10 : vector<1x3x2x128xf32>
    %12 = vector.extract_strided_slice %11 {offsets = [0, 0, 0, 0], sizes = [1, 1, 2, 128], strides = [1, 1, 1, 1]} : vector<1x3x2x128xf32> to vector<1x1x2x128xf32>
    %cst_14 = arith.constant 2.990000e-01 : f32
    %13 = vector.broadcast %cst_14 : f32 to vector<1x1x2x128xf32>
    %14 = arith.mulf %13, %12 : vector<1x1x2x128xf32>
    %15 = vector.extract_strided_slice %11 {offsets = [0, 1, 0, 0], sizes = [1, 1, 2, 128], strides = [1, 1, 1, 1]} : vector<1x3x2x128xf32> to vector<1x1x2x128xf32>
    %cst_15 = arith.constant 5.870000e-01 : f32
    %16 = vector.broadcast %cst_15 : f32 to vector<1x1x2x128xf32>
    %17 = arith.mulf %16, %15 : vector<1x1x2x128xf32>
    %18 = arith.addf %14, %17 : vector<1x1x2x128xf32>
    %19 = vector.extract_strided_slice %11 {offsets = [0, 2, 0, 0], sizes = [1, 1, 2, 128], strides = [1, 1, 1, 1]} : vector<1x3x2x128xf32> to vector<1x1x2x128xf32>
    %cst_16 = arith.constant 1.140000e-01 : f32
    %20 = vector.broadcast %cst_16 : f32 to vector<1x1x2x128xf32>
    %21 = arith.mulf %20, %19 : vector<1x1x2x128xf32>
    %22 = arith.addf %18, %21 : vector<1x1x2x128xf32>
    %cst_17 = arith.constant 0.000000e+00 : f32
    %cst_18 = arith.constant 1.000000e+00 : f32
    %23 = vector.broadcast %cst_17 : f32 to vector<1x1x2x128xf32>
    %24 = arith.maximumf %23, %22 : vector<1x1x2x128xf32>
    %25 = vector.broadcast %cst_18 : f32 to vector<1x1x2x128xf32>
    %26 = arith.minimumf %25, %24 : vector<1x1x2x128xf32>
    %cst_19 = arith.constant 0.000000e+00 : f32
    %27 = vector.broadcast %cst_19 : f32 to vector<1x3x2x128xf32>
    %28 = arith.cmpf ole, %2, %27 : vector<1x3x2x128xf32>
    %cst_20 = arith.constant 1.000000e+00 : f32
    %29 = vector.broadcast %cst_20 : f32 to vector<1x3x2x128xf32>
    %30 = arith.select %28, %29, %2 : vector<1x3x2x128xi1>, vector<1x3x2x128xf32>
    %31 = arith.divf %1, %30 : vector<1x3x2x128xf32>
    %cst_21 = arith.constant 0.000000e+00 : f32
    %cst_22 = arith.constant 1.000000e+00 : f32
    %32 = vector.broadcast %cst_21 : f32 to vector<1x3x2x128xf32>
    %33 = arith.maximumf %32, %31 : vector<1x3x2x128xf32>
    %34 = vector.broadcast %cst_22 : f32 to vector<1x3x2x128xf32>
    %35 = arith.minimumf %34, %33 : vector<1x3x2x128xf32>
    %cst_23 = arith.constant 0.000000e+00 : f32
    %36 = vector.broadcast %cst_23 : f32 to vector<1x3x2x128xf32>
    %37 = arith.cmpf ole, %35, %36 : vector<1x3x2x128xf32>
    %cst_24 = arith.constant 1.000000e+00 : f32
    %38 = vector.broadcast %cst_24 : f32 to vector<1x3x2x128xf32>
    %39 = arith.select %37, %38, %35 : vector<1x3x2x128xi1>, vector<1x3x2x128xf32>
    %40 = arith.divf %1, %39 : vector<1x3x2x128xf32>
    %cst_25 = arith.constant 0.000000e+00 : f32
    %cst_26 = arith.constant 1.000000e+00 : f32
    %41 = vector.broadcast %cst_25 : f32 to vector<1x3x2x128xf32>
    %42 = arith.maximumf %41, %40 : vector<1x3x2x128xf32>
    %43 = vector.broadcast %cst_26 : f32 to vector<1x3x2x128xf32>
    %44 = arith.minimumf %43, %42 : vector<1x3x2x128xf32>
    %45 = arith.mulf %44, %39 : vector<1x3x2x128xf32>
    %46 = vector.broadcast %26 : vector<1x1x2x128xf32> to vector<1x3x2x128xf32>
    %47 = arith.mulf %45, %46 : vector<1x3x2x128xf32>
    %cst_27 = arith.constant 0.000000e+00 : f32
    %cst_28 = arith.constant 1.000000e+00 : f32
    %48 = vector.broadcast %cst_27 : f32 to vector<1x3x2x128xf32>
    %49 = arith.maximumf %48, %47 : vector<1x3x2x128xf32>
    %50 = vector.broadcast %cst_28 : f32 to vector<1x3x2x128xf32>
    %51 = arith.minimumf %50, %49 : vector<1x3x2x128xf32>
    %cst_29 = arith.constant 2.000000e+00 : f32
    %52 = vector.broadcast %cst_29 : f32 to vector<1x3x2x128xf32>
    %53 = arith.mulf %51, %52 : vector<1x3x2x128xf32>
    %cst_30 = arith.constant 1.000000e+00 : f32
    %54 = vector.broadcast %cst_30 : f32 to vector<1x3x2x128xf32>
    %55 = arith.subf %53, %54 : vector<1x3x2x128xf32>
    %c0_31 = arith.constant 0 : index
    %c0_32 = arith.constant 0 : index
    %c0_33 = arith.constant 0 : index
    %c0_34 = arith.constant 0 : index
    %56 = vector.load %arg5[%c0_31, %c0_32, %c0_33, %c0_34] : memref<1x3x2x128xf32, #tpu.memory_space<vmem>>, vector<1x3x2x128xf32>
    tpu.vector_store %arg5[%c0_31, %c0_32, %c0_33, %c0_34], %55 {strides = array<i32>} : memref<1x3x2x128xf32, #tpu.memory_space<vmem>>, vector<1x3x2x128xf32>,
    %cst_35 = arith.constant 2.000000e+00 : f32
    %57 = vector.broadcast %cst_35 : f32 to vector<1x3x2x128xf32>
    %58 = arith.mulf %44, %57 : vector<1x3x2x128xf32>
    %cst_36 = arith.constant 1.000000e+00 : f32
    %59 = vector.broadcast %cst_36 : f32 to vector<1x3x2x128xf32>
    %60 = arith.subf %58, %59 : vector<1x3x2x128xf32>
    %c0_37 = arith.constant 0 : index
    %c0_38 = arith.constant 0 : index
    %c0_39 = arith.constant 0 : index
    %c0_40 = arith.constant 0 : index
    %61 = vector.load %arg6[%c0_37, %c0_38, %c0_39, %c0_40] : memref<1x3x2x128xf32, #tpu.memory_space<vmem>>, vector<1x3x2x128xf32>
    tpu.vector_store %arg6[%c0_37, %c0_38, %c0_39, %c0_40], %60 {strides = array<i32>} : memref<1x3x2x128xf32, #tpu.memory_space<vmem>>, vector<1x3x2x128xf32>,
    %cst_41 = arith.constant 2.000000e+00 : f32
    %62 = vector.broadcast %cst_41 : f32 to vector<1x3x2x128xf32>
    %63 = arith.mulf %39, %62 : vector<1x3x2x128xf32>
    %cst_42 = arith.constant 1.000000e+00 : f32
    %64 = vector.broadcast %cst_42 : f32 to vector<1x3x2x128xf32>
    %65 = arith.subf %63, %64 : vector<1x3x2x128xf32>
    %c0_43 = arith.constant 0 : index
    %c0_44 = arith.constant 0 : index
    %c0_45 = arith.constant 0 : index
    %c0_46 = arith.constant 0 : index
    %66 = vector.load %arg7[%c0_43, %c0_44, %c0_45, %c0_46] : memref<1x3x2x128xf32, #tpu.memory_space<vmem>>, vector<1x3x2x128xf32>
    tpu.vector_store %arg7[%c0_43, %c0_44, %c0_45, %c0_46], %65 {strides = array<i32>} : memref<1x3x2x128xf32, #tpu.memory_space<vmem>>, vector<1x3x2x128xf32>,
    %cst_47 = arith.constant 2.000000e+00 : f32
    %67 = vector.broadcast %cst_47 : f32 to vector<1x1x2x128xf32>
    %68 = arith.mulf %26, %67 : vector<1x1x2x128xf32>
    %cst_48 = arith.constant 1.000000e+00 : f32
    %69 = vector.broadcast %cst_48 : f32 to vector<1x1x2x128xf32>
    %70 = arith.subf %68, %69 : vector<1x1x2x128xf32>
    %c0_49 = arith.constant 0 : index
    %c0_50 = arith.constant 0 : index
    %c0_51 = arith.constant 0 : index
    %c0_52 = arith.constant 0 : index
    %71 = vector.load %arg8[%c0_49, %c0_50, %c0_51, %c0_52] : memref<1x1x2x128xf32, #tpu.memory_space<vmem>>, vector<1x1x2x128xf32>
    tpu.vector_store %arg8[%c0_49, %c0_50, %c0_51, %c0_52], %70 {strides = array<i32>} : memref<1x1x2x128xf32, #tpu.memory_space<vmem>>, vector<1x1x2x128xf32>,
    return
  }
  func.func @transform_0(%arg0: i32, %arg1: i32) -> (i32, i32, i32, i32) {
    %c0_i32 = arith.constant 0 : i32
    %c0_i32_0 = arith.constant 0 : i32
    %c0_i32_1 = arith.constant 0 : i32
    return %arg0, %c0_i32, %arg1, %c0_i32_0 : i32, i32, i32, i32
  }
  func.func @transform_1(%arg0: i32, %arg1: i32) -> (i32, i32, i32, i32) {
    %c0_i32 = arith.constant 0 : i32
    %c0_i32_0 = arith.constant 0 : i32
    %c0_i32_1 = arith.constant 0 : i32
    return %arg0, %c0_i32, %arg1, %c0_i32_0 : i32, i32, i32, i32
  }
  func.func @transform_2(%arg0: i32, %arg1: i32) -> (i32, i32, i32, i32) {
    %c0_i32 = arith.constant 0 : i32
    %c0_i32_0 = arith.constant 0 : i32
    %c0_i32_1 = arith.constant 0 : i32
    return %arg0, %c0_i32, %arg1, %c0_i32_0 : i32, i32, i32, i32
  }
  func.func @transform_3(%arg0: i32, %arg1: i32) -> (i32, i32, i32, i32) {
    %c0_i32 = arith.constant 0 : i32
    %c0_i32_0 = arith.constant 0 : i32
    %c0_i32_1 = arith.constant 0 : i32
    return %arg0, %c0_i32, %arg1, %c0_i32_0 : i32, i32, i32, i32
  }
  func.func @transform_4(%arg0: i32, %arg1: i32) -> (i32, i32, i32, i32) {
    %c0_i32 = arith.constant 0 : i32
    %c0_i32_0 = arith.constant 0 : i32
    %c0_i32_1 = arith.constant 0 : i32
    return %arg0, %c0_i32, %arg1, %c0_i32_0 : i32, i32, i32, i32
  }
  func.func @transform_5(%arg0: i32, %arg1: i32) -> (i32, i32, i32, i32) {
    %c0_i32 = arith.constant 0 : i32
    %c0_i32_0 = arith.constant 0 : i32
    %c0_i32_1 = arith.constant 0 : i32
    return %arg0, %c0_i32, %arg1, %c0_i32_0 : i32, i32, i32, i32
  }
  func.func @transform_6(%arg0: i32, %arg1: i32) -> (i32, i32, i32, i32) {
    %c0_i32 = arith.constant 0 : i32
    %c0_i32_0 = arith.constant 0 : i32
    %c0_i32_1 = arith.constant 0 : i32
    return %arg0, %c0_i32, %arg1, %c0_i32_0 : i32, i32, i32, i32
  }
}

</mosaic_0001>

<bundles_post_ra>
// kernel: tpu_custom_call.1
= control target key start
LH: loop header
LB: loop body
LE: loop exit
PB: predicated region body
PF: predicated region fallthrough
CT: control target
= control target key end

     0   :  { %s1654_s0 = inlined_call_operand.hbm [shape: f32[2,3,2,128], index: 0, kind: input, shape index: {}]   ;;  %s1655_s1 = inlined_call_operand.hbm [shape: f32[2,3,2,128], index: 1, kind: input, shape index: {}]   ;;  %s1656_s2 = inlined_call_operand.hbm [shape: f32[2,3,2,128], index: 2, kind: input, shape index: {}]   ;;  %s1657_s3 = inlined_call_operand.hbm [shape: f32[2,3,2,128], index: 3, kind: output, shape index: {0}]   ;;  %s1658_s4 = inlined_call_operand.hbm [shape: f32[2,3,2,128], index: 4, kind: output, shape index: {1}]   ;;  %s1659_s5 = inlined_call_operand.hbm [shape: f32[2,3,2,128], index: 5, kind: output, shape index: {2}]   ;;  %s1660_s6 = inlined_call_operand.hbm [shape: f32[2,1,2,128], index: 6, kind: output, shape index: {3}]  }
   0x1   :  { %1670 = sst [smem:[#allocation24_spill]] %s1655_s1 }
   0x2   :  { %1671 = sst [smem:[#allocation25_spill]] %s1657_s3 }
   0x3   :  { %12 = vsyncpa [#allocation3], 0 }
   0x4   :  { %14 = vsyncpa [#allocation3 + $0x1], 0 }
   0x5   :  { %15 = vsyncpa [#allocation6], 0 }
   0x6   :  { %17 = vsyncpa [#allocation6 + $0x1], 0 }
   0x7   :  { %18 = vsyncpa [#allocation4], 0 }
   0x8   :  { %20 = vsyncpa [#allocation4 + $0x1], 0 }
   0x9   :  { %21 = vsyncpa [#allocation10], 0 }
   0xa   :  { %23 = vsyncpa [#allocation10 + $0x1], 0 }
   0xb   :  { %24 = vsyncpa [#allocation13], 0 }
   0xc   :  { %26 = vsyncpa [#allocation13 + $0x1], 0  ;;  %s1271_s21 = smov 0   ;;  %s1273_s22 = smov 0  }
   0xd   :  { %s1275_s23 = smov 0   ;;  %s1277_s24 = smov 0  }
   0xe   :  { %s1279_s25 = smov 0   ;;  %s1281_s26 = smov 0  }
   0xf LB: > { %1672 = sst [smem:[#allocation19_spill]] %s1203_s21  ;;  %s1302_s27 = sadd.s32 4294967295, %s1223_s26   ;;  %s1223_s26 = sphi %s1281_s26, %s32_s26   ;;  %s1219_s25 = sphi %s1279_s25, %s1693_s25   ;;  %s1215_s24 = sphi %s1277_s24, %s1692_s24   ;;  %s1211_s23 = sphi %s1275_s23, %s1696_s23   ;;  %s1207_s22 = sphi %s1273_s22, %s1695_s22   ;;  %s1203_s21 = sphi %s1271_s21, %s1694_s21  }
  0x10   : > { %1673 = sst [smem:[#allocation20_spill]] %s1219_s25  ;;  %s1661_s28 = sadd.s32 4294967294, %s1223_s26  }
  0x11   : > { %s44_s29 = sadd.s32 1, %s1219_s25  ;;  %s53_s30 = sadd.s32 1, %s1211_s23 }
  0x12   : > { %p46_p0 = scmp.ge.s32.totalorder %s44_s29, 2  ;;  %p60_p1 = scmp.ne.s32.totalorder %s1211_s23, %s1207_s22 }
  0x13   : > { %p61_p2 = scmp.eq.s32.totalorder %s1223_s26, 0  ;;  %p66_p3 = scmp.ne.s32.totalorder %s1207_s22, %s1203_s21 }
  0x14   : > { %s1698_s29 = smov (%p46_p0, %s44_s29), 0  ;;  %p67_p5 = scmp.eq.s32.totalorder %s1302_s27, 0 }
  0x15   : > { %1674 = sst [smem:[#allocation21_spill]] %s1698_s29  ;;  %p1314_p4 = por %p61_p2, %p60_p1 }
  0x16   : > { %s48_s8 = ssub.s32 %s1219_s25, %s1698_s29  ;;  %p148_p6 = scmp.eq.s32.totalorder %s1302_s27, 1 }
  0x17   : > { %p51_p7 = scmp.eq.s32.totalorder %s48_s8, 0  ;;  %p1322_p8 = por %p67_p5, %p66_p3 }
  0x18   : > { %p1326_p9 = por %p148_p6, %p60_p1  ;;  %p154_p10 = scmp.eq.s32.totalorder %s1661_s28, 1 }
  0x19   : > { %s1333_s11 = scalar_select %p51_p7, %s1211_s23, %s53_s30  }
  0x1a   : > { %p1335_p11 = por %p154_p10, %p66_p3  ;;  %p897_p13 = scmp.lt.s32.totalorder %s1223_s26, 2 }
  0x1b   : > { %1678 = sst [smem:[#allocation22_spill]] %s1333_s11  ;;  %s1662_s13 = sand.u32 1, %s1211_s23  }
  0x1c   : > { %s1679_s12 = scalar_select %p1335_p11, 1, 0 }
  0x1d   : > { %s1344_s14 = smul.u32 6, %s1662_s13  ;;  %p1351_p0 = pnand %p897_p13, %p1314_p4 }
  0x1e   : > { %1680 = sst [smem:[#allocation23_spill]] %s1679_s12  ;;  %s1347_s15 = smul.u32 96, %s1219_s25 }
  0x1f   : > { %s280_s17 = sand.u32 1, %s1223_s26   ;;  %s1682_s1 = sld [smem:[#allocation24_spill]] }
  0x20   : > { %s284_s30 = scalar_lea.vmem [#allocation5], %s1344_s14  ;;  %p831_p1 = scmp.ge.s32.totalorder %s1223_s26, 1 }
  0x21   : > { %s292_s8 = sshll.u32 %s284_s30, 4  ;;  %p322_p2 = scmp.lt.s32.totalorder %s1223_s26, 3  ;;  %s293_s8 = int_to_ptr.vmem [resolvable:$true] %s292_s8 }
  0x22   : > { %s1363_s28 = scalar_lea.sflag [#allocation6], %s280_s17  ;;  %p971_p3 = pneg %p1351_p0 }
  0x23   : > { %s982_s7 = scalar_lea.vmem %s293_s8, 96  ;;  %s1225_s13 = smov [#allocation5]  }
  0x24   : > { %p983_p4 = scmp.ne.s32.totalorder %s293_s8, %s982_s7  ;;  %s987_s29 = sshll.u32 %s1225_s13, 4  ;;  %s988_s29 = int_to_ptr.vmem [resolvable:$false] %s987_s29 }
  0x25   : > { %s291_s20 = scalar_lea.hbm %s1682_s1, %s1347_s15  ;;  %s989_s18 = scalar_lea.vmem %s988_s29, 192 }
  0x26   : > { %p985_p5 = pnand %p983_p4, %p971_p3  ;;  %p990_p7 = scmp.lt.s32.totalorder %s293_s8, %s988_s29 }
  0x27   : > { %p991_p10 = scmp.lt.s32.totalorder %s989_s18, %s982_s7 }
  0x28   : > { %p986_p6 = pneg %p985_p5 }
  0x29   : > { %p992_p13 = por %p991_p10, %p990_p7 }
  0x2b   : > { %p993_p12 = pnand %p992_p13, %p986_p6 }
  0x2d   : > { %996 = shalt.err (!%p993_p12)
}
  0x2e   : > { %s1668_s19 = smov 32   ;;  %s1227_s17 = smov 2  }
  0x2f   : > { %880 = dma.hbm_to_vmem [thread:$0]  (!%p1351_p0), %s291_s20, 96, %s293_s8, %s1363_s28, %s1668_s19, %s1668_s19, %s1227_s17  }
  0x30   : > { %p1380_p4 = pnand %p831_p1, %p322_p2  ;;  %s269_s7 = scalar_lea.hbm %s1654_s0, %s1347_s15 }
  0x31   : > { %s262_s18 = scalar_lea.vmem [#allocation2], %s1344_s14  ;;  %s313_s12 = scalar_lea.hbm %s1656_s2, %s1347_s15 }
  0x32   : > { %s270_s1 = sshll.u32 %s262_s18, 4  ;;  %s1684_s21 = sand.u32 1, %s1211_s23   ;;  %s271_s1 = int_to_ptr.vmem [resolvable:$true] %s270_s1 }
  0x33   : > { %s259_s3 = scalar_lea.sflag [#allocation3], %s1684_s21  ;;  %s1010_s20 = scalar_lea.vmem %s271_s1, 96 }
  0x34   : > { %p1011_p12 = scmp.ne.s32.totalorder %s271_s1, %s1010_s20  ;;  %s1228_s8 = smov [#allocation2]  }
  0x35   : > { %s1015_s19 = sshll.u32 %s1228_s8, 4  ;;  %s1016_s19 = int_to_ptr.vmem [resolvable:$false] %s1015_s19 }
  0x36   : > { %p1013_p1 = pnand %p1011_p12, %p971_p3  ;;  %s1017_s13 = scalar_lea.vmem %s1016_s19, 192 }
  0x37   : > { %p1018_p5 = scmp.lt.s32.totalorder %s271_s1, %s1016_s19  ;;  %p1019_p6 = scmp.lt.s32.totalorder %s1017_s13, %s1010_s20 }
  0x38   : > { %p1014_p2 = pneg %p1013_p1 }
  0x39   : > { %p1020_p7 = por %p1019_p6, %p1018_p5 }
  0x3b   : > { %p1021_p10 = pnand %p1020_p7, %p1014_p2 }
  0x3d   : > { %1024 = shalt.err (!%p1021_p10)
}
  0x3e   : > { %s1685_s25 = smov 32   ;;  %s306_s21 = scalar_lea.vmem [#allocation7], %s1344_s14 }
  0x3f   : > { %877 = dma.hbm_to_vmem [thread:$0]  (!%p1351_p0), %s269_s7, 96, %s271_s1, %s259_s3, %s1685_s25, %s1685_s25, %s1227_s17  }
  0x40   : > { %s314_s11 = sshll.u32 %s306_s21, 4  ;;  %s1229_s19 = smov [#allocation7]   ;;  %s315_s11 = int_to_ptr.vmem [resolvable:$true] %s314_s11 }
  0x41   : > { %s1038_s30 = scalar_lea.vmem %s315_s11, 96  ;;  %s1043_s18 = sshll.u32 %s1229_s19, 4  ;;  %s1044_s18 = int_to_ptr.vmem [resolvable:$false] %s1043_s18 }
  0x42   : > { %p1039_p13 = scmp.ne.s32.totalorder %s315_s11, %s1038_s30  ;;  %s1045_s20 = scalar_lea.vmem %s1044_s18, 192 }
  0x43   : > { %p1046_p2 = scmp.lt.s32.totalorder %s315_s11, %s1044_s18  ;;  %p1047_p5 = scmp.lt.s32.totalorder %s1045_s20, %s1038_s30 }
  0x44   : > { %p1041_p12 = pnand %p1039_p13, %p971_p3 }
  0x45   : > { %p1048_p6 = por %p1047_p5, %p1046_p2 }
  0x46   : > { %p1042_p1 = pneg %p1041_p12 }
  0x48   : > { %p1049_p7 = pnand %p1048_p6, %p1042_p1 }
  0x4a   : > { %1052 = shalt.err (!%p1049_p7)
}
  0x4b   : > { %883 = dma.hbm_to_vmem [thread:$0]  (!%p1351_p0), %s313_s12, 96, %s315_s11, %s1363_s28, %s1685_s25, %s1685_s25, %s1227_s17  }
  0x4c   : > { %326 = sbr.rel (%p1380_p4) target bundleno = 205 (0xcd), region = 32  ;;  %s1421_s14 = sand.u32 (!%p1380_p4), 1, %s1207_s22  }
  0x4d   : > { %s1424_s16 = smul.u32 (!%p1380_p4), 6, %s1421_s14  ;;  %s329_s7 = scalar_lea.sflag (!%p1380_p4), [#allocation3], %s1421_s14 }
  0x4f   : > { %s1428_s8 = scalar_lea.vmem (!%p1380_p4), [#allocation2], %s1424_s16 }
  0x51   : > { %1182 = dma.done.wait (%p1322_p8), %s329_s7, 96  }
  0x52   : > { %1184 = vsyncadd (%p1322_p8), %s329_s7, 4294967200  ;;  %s337_s28 = sand.u32 1, %s1302_s27   ;;  %s341_s15 = scalar_lea.vmem [#allocation5], %s1424_s16 }
  0x53   : > { %s338_s12 = scalar_lea.sflag [#allocation6], %s337_s28 }
  0x54   : > { %1186 = dma.done.wait (%p1322_p8), %s338_s12, 192  }
  0x55   : > { %1188 = vsyncadd (%p1322_p8), %s338_s12, 4294967104  ;;  %v1442_v0 = vld [vmem:[%s341_s15] sm:$0x3]  ;;  %s350_s17 = scalar_lea.vmem [#allocation7], %s1424_s16  ;;  %v1445_v2 = vld [vmem:[%s341_s15 + $0x2] sm:$0x3] }
  0x56   : > { %v410_v1 = vld [vmem:[%s350_s17] sm:$0x3]  ;;  %vm419_vm0 = vcmp.le.f32.partialorder %v1442_v0, 0.0  ;;  %v411_v3 = vld [vmem:[%s350_s17 + $0x2] sm:$0x3]  ;;  %vm420_vm2 = vcmp.le.f32.partialorder %v1445_v2, 0.0 }
  0x57   : > { %vm438_vm1 = vcmp.le.f32.partialorder %v410_v1, 0.0  ;;  %v422_v4 = vsel %vm419_vm0, 1.0, %v1442_v0  ;;  %v423_v6 = vsel %vm420_vm2, 1.0, %v1445_v2  ;;  %vm439_vm3 = vcmp.le.f32.partialorder %v411_v3, 0.0  ;;  %v1451_v7 = vld [vmem:[%s341_s15 + $0x4] sm:$0x3] }
  0x58   : > { %v441_v5 = vsel %vm438_vm1, 1.0, %v410_v1  ;;  %951 = vrcp.f32 %v422_v4  ;;  %v442_v8 = vsel %vm439_vm3, 1.0, %v411_v3  ;;  %v412_v9 = vld [vmem:[%s350_s17 + $0x4] sm:$0x3]  ;;  %vm421_vm4 = vcmp.le.f32.partialorder %v1451_v7, 0.0  ;;  %s832_s9 = sshll.u32 %s1421_s14, 1 }
  0x59   : > { %953 = vrcp.f32 %v441_v5  ;;  %v424_v10 = vsel %vm421_vm4, 1.0, %v1451_v7  ;;  %vm440_vm5 = vcmp.le.f32.partialorder %v412_v9, 0.0  ;;  %v404_v12 = vld [vmem:[%s1428_s8] sm:$0x3]  ;;  %v405_v13 = vld [vmem:[%s1428_s8 + $0x2] sm:$0x3] }
  0x5a   : > { %955 = vrcp.f32 %v423_v6  ;;  %v443_v11 = vsel %vm440_vm5, 1.0, %v412_v9  ;;  %vm413_vm6 = vcmp.le.f32.partialorder %v404_v12, 0.0  ;;  %v406_v14 = vld [vmem:[%s1428_s8 + $0x4] sm:$0x3]  ;;  %vm414_vm7 = vcmp.le.f32.partialorder %v405_v13, 0.0  ;;  %s403_s29 = scalar_lea.vmem [#allocation12], %s832_s9 }
  0x5b   : > { %957 = vrcp.f32 %v442_v8  ;;  %v416_v15 = vsel %vm413_vm6, 1.0, %v404_v12  ;;  %vm415_vm8 = vcmp.le.f32.partialorder %v406_v14, 0.0  ;;  %v417_v17 = vsel %vm414_vm7, 1.0, %v405_v13  ;;  %s597_s13 = sshll.u32 %s403_s29, 4  ;;  %s1476_s25 = scalar_lea.vmem [#allocation11], %s1424_s16  ;;  %s1483_s13 = int_to_ptr.vmem [resolvable:$true] %s597_s13 }
  0x5c   : > { %959 = vrcp.f32 %v424_v10  ;;  %v418_v22 = vsel %vm415_vm8, 1.0, %v406_v14  ;;  %s847_s21 = sshll.u32 %s1215_s24, 5  ;;  %s532_s18 = scalar_lea.sflag [#allocation13], %s1421_s14 }
  0x5d   : > { %961 = vrcp.f32 %v443_v11  ;;  %s595_s19 = scalar_lea.hbm %s1660_s6, %s847_s21  ;;  %s1053_s20 = scalar_lea.vmem %s1483_s13, 32 }
  0x5e   : > { %p1054_p8 = scmp.ne.s32.totalorder %s1483_s13, %s1053_s20  ;;  %s1230_s1 = smov [#allocation12]  }
  0x5f   : > { %s1057_s3 = sshll.u32 %s1230_s1, 4  ;;  %s1058_s3 = int_to_ptr.vmem [resolvable:$false] %s1057_s3 }
  0x60   : > { %p1055_p0 = pnand %p1054_p8, %p1326_p9  ;;  %s1059_s7 = scalar_lea.vmem %s1058_s3, 64 }
  0x61   : > { %p1060_p4 = scmp.lt.s32.totalorder %s1483_s13, %s1058_s3  ;;  %p1061_p10 = scmp.lt.s32.totalorder %s1059_s7, %s1053_s20 }
  0x62   : > { %p1056_p3 = pneg %p1055_p0 }
  0x63   : > { %p1062_p13 = por %p1061_p10, %p1060_p4 }
  0x65   : > { %v952_v16 = vpop.eup %951  ;;  %p1063_p12 = pnand %p1062_p13, %p1056_p3 }
  0x66   : > { %v954_v18 = vpop.eup %953  ;;  %v426_v19 = vmul.f32 %v952_v16, %v416_v15 }
  0x67   : > { %v956_v20 = vpop.eup %955  ;;  %v445_v21 = vmul.f32 %v954_v18, %v1442_v0 }
  0x68   : > { %v958_v23 = vpop.eup %957  ;;  %v428_v24 = vmul.f32 %v956_v20, %v417_v17  ;;  %v431_v25 = vmul.f32 0.299, %v426_v19 }
  0x69   : > { %v960_v26 = vpop.eup %959  ;;  %v450_v27 = vmax.f32 %v445_v21, 0.0  ;;  %v447_v28 = vmul.f32 %v958_v23, %v1445_v2 }
  0x6a   : > { %v962_v29 = vpop.eup %961  ;;  %v430_v30 = vmul.f32 %v960_v26, %v418_v22  ;;  %v432_v31 = vmul.f32 0.587, %v428_v24 }
  0x6b   : > { %v453_v32 = vmin.f32 %v450_v27, 1.0  ;;  %v451_v33 = vmax.f32 %v447_v28, 0.0  ;;  %v449_v34 = vmul.f32 %v962_v29, %v1451_v7 }
  0x6c   : > { %v433_v35 = vadd.f32 %v432_v31, %v431_v25  ;;  %v434_v36 = vmul.f32 0.114, %v430_v30 }
  0x6d   : > { %vm456_vm9 = vcmp.le.f32.partialorder %v453_v32, 0.0  ;;  %v454_v37 = vmin.f32 %v451_v33, 1.0  ;;  %v452_v38 = vmax.f32 %v449_v34, 0.0 }
  0x6e   : > { %v1462_v39 = vsel %vm456_vm9, 1.0, %v453_v32  ;;  %v435_v40 = vadd.f32 %v434_v36, %v433_v35 }
  0x6f   : > { %963 = vrcp.f32 %v1462_v39  ;;  %vm457_vm10 = vcmp.le.f32.partialorder %v454_v37, 0.0  ;;  %v455_v41 = vmin.f32 %v452_v38, 1.0  ;;  %v504_v42 = vmul.f32 2.0, %v1462_v39 }
  0x70   : > { %v1466_v43 = vsel %vm457_vm10, 1.0, %v454_v37  ;;  %v436_v44 = vmax.f32 %v435_v40, 0.0 }
  0x71   : > { %965 = vrcp.f32 %v1466_v43  ;;  %vm458_vm11 = vcmp.le.f32.partialorder %v455_v41, 0.0  ;;  %v839_v45 = vadd.f32 -1.0, %v504_v42  ;;  %v505_v46 = vmul.f32 2.0, %v1466_v43 }
  0x72   : > { %v1470_v47 = vsel %vm458_vm11, 1.0, %v455_v41  ;;  %v1472_v48 = vmin.f32 %v436_v44, 1.0 }
  0x73   : > { %967 = vrcp.f32 %v1470_v47  ;;  %510 = vst [vmem:[%s1476_s25] sm:$0x3] %v839_v45  ;;  %v840_v49 = vadd.f32 -1.0, %v505_v46  ;;  %v506_v50 = vmul.f32 2.0, %v1470_v47 }
  0x74   : > { %v513_v51 = vmul.f32 2.0, %v1472_v48 }
  0x75   : > { %511 = vst [vmem:[%s1476_s25 + $0x2] sm:$0x3] %v840_v49  ;;  %v841_v52 = vadd.f32 -1.0, %v506_v50 }
  0x76   : > { %v842_v53 = vadd.f32 -1.0, %v513_v51 }
  0x77   : > { %512 = vst [vmem:[%s1476_s25 + $0x4] sm:$0x3] %v841_v52 }
  0x78   : > { %515 = vst [vmem:[%s403_s29] sm:$0x3] %v842_v53 }
  0x79   : > { %1066 = shalt.err (!%p1063_p12)
}
  0x7a   : > { %s1067_s8 = scalar_lea.hbm %s595_s19, 32  ;;  %s1071_s17 = scalar_lea.hbm %s1660_s6, 64 }
  0x7b   : > { %p1068_p1 = scmp.ne.s32.totalorder %s595_s19, %s1067_s8  ;;  %p1072_p6 = scmp.lt.s32.totalorder %s595_s19, %s1660_s6 }
  0x7c   : > { %p1073_p7 = scmp.lt.s32.totalorder %s1071_s17, %s1067_s8 }
  0x7d   : > { %p1069_p2 = pnand %p1068_p1, %p1326_p9 }
  0x7e   : > { %p1074_p8 = por %p1073_p7, %p1072_p6 }
  0x7f   : > { %p1070_p5 = pneg %p1069_p2 }
  0x81   : > { %p1075_p0 = pnand %p1074_p8, %p1070_p5 }
  0x83   : > { %1078 = shalt.err (!%p1075_p0)
}
  0x84   : > { %869 = dma.vmem_to_hbm [thread:$0]  (%p1326_p9), %s1483_s13, 32, %s595_s19, %s532_s18   ;;  %v964_v54 = vpop.eup %963 }
  0x85   : > { %v463_v55 = vmul.f32 %v964_v54, %v1442_v0  ;;  %v966_v56 = vpop.eup %965  ;;  %s389_s13 = scalar_lea.vmem [#allocation9], %s1424_s16  ;;  %s1512_s11 = smul.u32 96, %s1215_s24 }
  0x86   : > { %v465_v58 = vmul.f32 %v966_v56, %v1445_v2  ;;  %v968_v59 = vpop.eup %967  ;;  %s563_s21 = sshll.u32 %s389_s13, 4  ;;  %s580_s24 = sshll.u32 %s1476_s25, 4  ;;  %s1516_s21 = int_to_ptr.vmem [resolvable:$true] %s563_s21  ;;  %s1528_s24 = int_to_ptr.vmem [resolvable:$true] %s580_s24 }
  0x87   : > { %v468_v57 = vmax.f32 %v463_v55, 0.0  ;;  %v467_v62 = vmul.f32 %v968_v59, %v1451_v7  ;;  %s1525_s18 = scalar_lea.hbm %s1658_s4, %s1512_s11  ;;  %s1534_s1 = scalar_lea.hbm %s1659_s5, %s1512_s11 }
  0x88   : > { %v469_v61 = vmax.f32 %v465_v58, 0.0  ;;  %s1537_s3 = scalar_lea.vmem [#allocation8], %s1424_s16  ;;  %s1542_s8 = scalar_lea.sflag [#allocation10], %s337_s28 }
  0x89   : > { %v471_v60 = vmin.f32 %v468_v57, 1.0  ;;  %v470_v3 = vmax.f32 %v467_v62, 0.0  ;;  %s546_s7 = sshll.u32 %s1537_s3, 4  ;;  %s1079_s12 = scalar_lea.vmem %s1516_s21, 96  ;;  %s1595_s7 = int_to_ptr.vmem [resolvable:$true] %s546_s7 }
  0x8a   : > { %v472_v1 = vmin.f32 %v469_v61, 1.0  ;;  %p1080_p3 = scmp.ne.s32.totalorder %s1516_s21, %s1079_s12  ;;  %s1231_s15 = smov [#allocation9]  }
  0x8b   : > { %v495_v63 = vmul.f32 2.0, %v471_v60  ;;  %v474_v4 = vmul.f32 %v471_v60, %v1462_v39  ;;  %v473_v6 = vmin.f32 %v470_v3, 1.0  ;;  %s1083_s17 = sshll.u32 %s1231_s15, 4  ;;  %s1084_s17 = int_to_ptr.vmem [resolvable:$false] %s1083_s17 }
  0x8c   : > { %v496_v5 = vmul.f32 2.0, %v472_v1  ;;  %v475_v8 = vmul.f32 %v472_v1, %v1466_v43  ;;  %p1081_p4 = pnand %p1080_p3, %p1326_p9  ;;  %s1085_s9 = scalar_lea.vmem %s1084_s17, 192 }
  0x8d   : > { %v836_v0 = vadd.f32 -1.0, %v495_v63  ;;  %v477_v2 = vmul.f32 %v474_v4, %v1472_v48  ;;  %v497_v9 = vmul.f32 2.0, %v473_v6  ;;  %v476_v11 = vmul.f32 %v473_v6, %v1470_v47  ;;  %p1086_p13 = scmp.lt.s32.totalorder %s1516_s21, %s1084_s17  ;;  %p1087_p12 = scmp.lt.s32.totalorder %s1085_s9, %s1079_s12 }
  0x8e   : > { %v837_v7 = vadd.f32 -1.0, %v496_v5  ;;  %v478_v12 = vmul.f32 %v475_v8, %v1472_v48  ;;  %p1082_p10 = pneg %p1081_p4 }
  0x8f   : > { %501 = vst [vmem:[%s389_s13] sm:$0x3] %v836_v0  ;;  %v480_v10 = vmax.f32 %v477_v2, 0.0  ;;  %v838_v13 = vadd.f32 -1.0, %v497_v9  ;;  %v479_v15 = vmul.f32 %v476_v11, %v1472_v48  ;;  %p1088_p1 = por %p1087_p12, %p1086_p13 }
  0x90   : > { %502 = vst [vmem:[%s389_s13 + $0x2] sm:$0x3] %v837_v7  ;;  %v481_v16 = vmax.f32 %v478_v12, 0.0 }
  0x91   : > { %v483_v14 = vmin.f32 %v480_v10, 1.0  ;;  %503 = vst [vmem:[%s389_s13 + $0x4] sm:$0x3] %v838_v13  ;;  %v482_v18 = vmax.f32 %v479_v15, 0.0  ;;  %p1089_p2 = pnand %p1088_p1, %p1082_p10 }
  0x92   : > { %v484_v19 = vmin.f32 %v481_v16, 1.0 }
  0x93   : > { %v486_v17 = vmul.f32 2.0, %v483_v14 }
  0x94   : > { %1092 = shalt.err (!%p1089_p2)
}
  0x95   : > { %s1093_s27 = scalar_lea.hbm %s1525_s18, 96  ;;  %s1097_s29 = scalar_lea.hbm %s1658_s4, 192 }
  0x96   : > { %p1094_p5 = scmp.ne.s32.totalorder %s1525_s18, %s1093_s27  ;;  %p1098_p8 = scmp.lt.s32.totalorder %s1525_s18, %s1658_s4 }
  0x97   : > { %p1099_p0 = scmp.lt.s32.totalorder %s1097_s29, %s1093_s27 }
  0x98   : > { %p1095_p6 = pnand %p1094_p5, %p1326_p9 }
  0x99   : > { %p1100_p3 = por %p1099_p0, %p1098_p8 }
  0x9a   : > { %p1096_p7 = pneg %p1095_p6 }
  0x9c   : > { %p1101_p4 = pnand %p1100_p3, %p1096_p7 }
  0x9e   : > { %1104 = shalt.err (!%p1101_p4)
}
  0x9f   : > { %s1232_s19 = smov 32   ;;  %s1233_s25 = smov 2   ;;  %v833_v20 = vadd.f32 -1.0, %v486_v17  ;;  %v485_v21 = vmin.f32 %v482_v18, 1.0 }
  0xa0   : > { %867 = dma.vmem_to_hbm [thread:$0]  (%p1326_p9), %s1516_s21, 96, %s1525_s18, %s1542_s8, %s1232_s19, %s1232_s19, %s1233_s25  }
  0xa1   : > { %s1105_s20 = scalar_lea.vmem %s1528_s24, 96  ;;  %s1234_s12 = smov [#allocation11]  }
  0xa2   : > { %p1106_p10 = scmp.ne.s32.totalorder %s1528_s24, %s1105_s20  ;;  %s1109_s15 = sshll.u32 %s1234_s12, 4  ;;  %s1110_s15 = int_to_ptr.vmem [resolvable:$false] %s1109_s15 }
  0xa3   : > { %s1111_s17 = scalar_lea.vmem %s1110_s15, 192  ;;  %p1112_p1 = scmp.lt.s32.totalorder %s1528_s24, %s1110_s15 }
  0xa4   : > { %p1107_p13 = pnand %p1106_p10, %p1326_p9  ;;  %p1113_p2 = scmp.lt.s32.totalorder %s1111_s17, %s1105_s20 }
  0xa6   : > { %p1108_p12 = pneg %p1107_p13  ;;  %p1114_p5 = por %p1113_p2, %p1112_p1 }
  0xa8   : > { %p1115_p6 = pnand %p1114_p5, %p1108_p12 }
  0xaa   : > { %1118 = shalt.err (!%p1115_p6)
}
  0xab   : > { %s1119_s21 = scalar_lea.hbm %s1534_s1, 96  ;;  %s1123_s27 = scalar_lea.hbm %s1659_s5, 192 }
  0xac   : > { %p1120_p7 = scmp.ne.s32.totalorder %s1534_s1, %s1119_s21  ;;  %p1124_p3 = scmp.lt.s32.totalorder %s1534_s1, %s1659_s5 }
  0xad   : > { %p1125_p4 = scmp.lt.s32.totalorder %s1123_s27, %s1119_s21 }
  0xae   : > { %p1121_p8 = pnand %p1120_p7, %p1326_p9 }
  0xaf   : > { %p1126_p10 = por %p1125_p4, %p1124_p3 }
  0xb0   : > { %p1122_p0 = pneg %p1121_p8 }
  0xb2   : > { %p1127_p13 = pnand %p1126_p10, %p1122_p0 }
  0xb4   : > { %1130 = shalt.err (!%p1127_p13)
}
  0xb5   : > { %868 = dma.vmem_to_hbm [thread:$0]  (%p1326_p9), %s1528_s24, 96, %s1534_s1, %s1542_s8, %s1232_s19, %s1232_s19, %s1233_s25   ;;  %v487_v22 = vmul.f32 2.0, %v484_v19  ;;  %v488_v23 = vmul.f32 2.0, %v485_v21 }
  0xb6   : > { %492 = vst [vmem:[%s1537_s3] sm:$0x3] %v833_v20  ;;  %s1686_s30 = sld [smem:[#allocation25_spill]]  ;;  %s517_s12 = scalar_lea.sflag [#allocation4], %s1421_s14 }
  0xb7   : > { %v834_v24 = vadd.f32 -1.0, %v487_v22  ;;  %v835_v25 = vadd.f32 -1.0, %v488_v23  ;;  %s1131_s24 = scalar_lea.vmem %s1595_s7, 96  ;;  %s1235_s1 = smov [#allocation8]  }
  0xb8   : > { %p1132_p12 = scmp.ne.s32.totalorder %s1595_s7, %s1131_s24  ;;  %s1135_s8 = sshll.u32 %s1235_s1, 4  ;;  %s1136_s8 = int_to_ptr.vmem [resolvable:$false] %s1135_s8 }
  0xb9   : > { %493 = vst [vmem:[%s1537_s3 + $0x2] sm:$0x3] %v834_v24  ;;  %494 = vst [vmem:[%s1537_s3 + $0x4] sm:$0x3] %v835_v25  ;;  %s1137_s15 = scalar_lea.vmem %s1136_s8, 192  ;;  %p1138_p5 = scmp.lt.s32.totalorder %s1595_s7, %s1136_s8 }
  0xba   : > { %p1133_p1 = pnand %p1132_p12, %p1326_p9  ;;  %p1139_p6 = scmp.lt.s32.totalorder %s1137_s15, %s1131_s24 }
  0xbc   : > { %s1601_s20 = scalar_lea.hbm %s1686_s30, %s1512_s11  ;;  %p1134_p2 = pneg %p1133_p1 }
  0xbd   : > { %p1140_p7 = por %p1139_p6, %p1138_p5 }
  0xbf   : > { %p1141_p8 = pnand %p1140_p7, %p1134_p2 }
  0xc1   : > { %1144 = shalt.err (!%p1141_p8)
}
  0xc2   : > { %s1145_s11 = scalar_lea.hbm %s1601_s20, 96  ;;  %s1149_s17 = scalar_lea.hbm %s1686_s30, 192 }
  0xc3   : > { %p1146_p0 = scmp.ne.s32.totalorder %s1601_s20, %s1145_s11  ;;  %p1150_p10 = scmp.lt.s32.totalorder %s1601_s20, %s1686_s30 }
  0xc4   : > { %p1151_p13 = scmp.lt.s32.totalorder %s1149_s17, %s1145_s11 }
  0xc5   : > { %p1147_p3 = pnand %p1146_p0, %p1326_p9 }
  0xc6   : > { %p1152_p12 = por %p1151_p13, %p1150_p10 }
  0xc7   : > { %p1148_p4 = pneg %p1147_p3 }
  0xc9   : > { %p1153_p1 = pnand %p1152_p12, %p1148_p4 }
  0xcb   : > { %1156 = shalt.err (!%p1153_p1)
}
  0xcc   : > { %866 = dma.vmem_to_hbm [thread:$0]  (%p1326_p9), %s1595_s7, 96, %s1601_s20, %s517_s12, %s1232_s19, %s1232_s19, %s1233_s25  }
  0xcd PF: > { %s1687_s9 = sld [smem:[#allocation19_spill]]  ;;  %p1689_p2 = scmp.ge.s32.totalorder %s1223_s26, 2 }
  0xcf   : > { %p885_p5 = pnand %p1689_p2, %p1335_p11 }
  0xd1   : > { %p886_p6 = pneg %p885_p5 }
  0xd3   : > { %s609_s16 = sand.u32 1, %s1687_s9  }
  0xd4   : > { %s610_s28 = scalar_lea.sflag [#allocation4], %s609_s16 }
  0xd5   : > { %1190 = dma.done.wait (%p886_p6), %s610_s28, 96  }
  0xd6   : > { %1192 = vsyncadd (%p886_p6), %s610_s28, 4294967200  ;;  %s1690_s10 = sadd.s32 4294967294, %s1223_s26  }
  0xd7   : > { %s618_s29 = sand.u32 1, %s1690_s10  }
  0xd8   : > { %s619_s13 = scalar_lea.sflag [#allocation10], %s618_s29 }
  0xd9   : > { %1194 = dma.done.wait (%p886_p6), %s619_s13, 192  }
  0xda   : > { %1196 = vsyncadd (%p886_p6), %s619_s13, 4294967104  ;;  %s637_s24 = scalar_lea.sflag [#allocation13], %s609_s16 }
  0xdb   : > { %1198 = dma.done.wait (%p886_p6), %s637_s24, 32  }
  0xdc   : > { %1200 = vsyncadd (%p886_p6), %s637_s24, 4294967264  ;;  %s32_s26 = sadd.s32 1, %s1223_s26   ;;  %s1691_s7 = sld [smem:[#allocation22_spill]] }
  0xdd   : > { %p29_p9 = scmp.ge.s32.totalorder %s32_s26, 4   ;;  %s1692_s24 = sld [smem:[#allocation20_spill]] }
  0xde   : > { %s1693_s25 = sld [smem:[#allocation21_spill]]  ;;  %s1694_s21 = smov %s1207_s22 }
  0xdf   : > { %s1695_s22 = smov %s1211_s23  ;;  %31 = sbr.rel (!%p29_p9) target bundleno = 15 (0xf), region = 150 }
  0xe2   : > { %s1696_s23 = smov %s1691_s7 }
  0xe4   :  { %642 = vsyncpa [#allocation3], 1 }
  0xe5   :  { %644 = vsyncpa [#allocation3 + $0x1], 1 }
  0xe6   :  { %645 = vsyncpa [#allocation6], 1 }
  0xe7   :  { %647 = vsyncpa [#allocation6 + $0x1], 1 }
  0xe8   :  { %648 = vsyncpa [#allocation4], 1 }
  0xe9   :  { %650 = vsyncpa [#allocation4 + $0x1], 1 }
  0xea   :  { %651 = vsyncpa [#allocation10], 1 }
  0xeb   :  { %653 = vsyncpa [#allocation10 + $0x1], 1 }
  0xec   :  { %654 = vsyncpa [#allocation13], 1 }
  0xed   :  { %656 = vsyncpa [#allocation13 + $0x1], 1 }

</bundles_post_ra>
